<compile_context>
chip_gen: v6e
topology: v6e:2x2x1
jax: 0.10.0
libtpu: 0.0.40
codegen_flags: <defaults>
</compile_context>

<pallas_src>
import jax
import jax.numpy as jnp
from jax.experimental import pallas as pl
from jax.experimental.pallas import tpu as pltpu


def _round_up(x, m):
    return ((x + m - 1) // m) * m


# MXU-aligned tile targets.  M/N tiles cap at 256/512; K tiles may grow to 2048 in the
# small-M regime subject to the VMEM budget below.
_TM, _TN, _TK = 256, 512, 2048
# Conservative per-call VMEM budget for double-buffered tiles + accumulator: well inside
# v7x's 32 MiB scoped default (64 MiB physical); tiny vs v5e/v6e's 128 MiB.
_VMEM_BUDGET = 20 * 1024 * 1024


def _pick_tm(M, target=_TM):
    """Return (tm, Mp).  Prefers tiles that divide M exactly so A never needs M-padding."""
    if M <= target:
        return M, M                       # full-dim block is legal for any M
    for t in range(target, 7, -8):
        if M % t == 0:
            return t, M
    return target, _round_up(M, target)   # rare fallback: pad M, slice output


def _largest_tile(n, cap, quantum=128):
    """Largest multiple of `quantum` dividing n and <= cap (n is a multiple of quantum)."""
    best = quantum
    t = quantum
    while t <= min(n, cap):
        if n % t == 0:
            best = t
        t += quantum
    return best


def _pick_tk(Kp, tm, tn, cap=_TK):
    tk = _largest_tile(Kp, cap)
    while tk > 128:
        # double-buffered bf16 A/B/out/residual tiles + f32 accumulator scratch
        vmem = 4 * (tm * tk + tk * tn + 3 * tm * tn)
        if vmem <= _VMEM_BUDGET:
            break
        tk = _largest_tile(Kp, tk - 128)
    return tk


# ----------------------------------------------------------------------------
# Fused tiled matmul: conv/linear + folded BN shift [+ residual] [+ ReLU]
# ----------------------------------------------------------------------------

def _make_matmul_kernel(has_residual, relu):
    """acc(k) += a @ b ; at last k: o = [relu](acc + shift [+ residual]) cast to bf16."""
    def kernel(*refs):
        if has_residual:
            a_ref, b_ref, shift_ref, res_ref, o_ref, acc_ref = refs
        else:
            a_ref, b_ref, shift_ref, o_ref, acc_ref = refs
            res_ref = None
        k = pl.program_id(2)

        @pl.when(k == 0)
        def _():
            acc_ref[...] = jnp.zeros_like(acc_ref)

        acc_ref[...] += jnp.dot(a_ref[...], b_ref[...],
                                preferred_element_type=jnp.float32)

        @pl.when(k == pl.num_programs(2) - 1)
        def _():
            acc = acc_ref[...] + shift_ref[...]
            if has_residual:
                acc = acc + res_ref[...].astype(jnp.float32)
            if relu:
                acc = jnp.maximum(acc, 0.0)
            o_ref[...] = acc.astype(o_ref.dtype)
    return kernel


def fused_matmul(a, w, shift, residual=None, relu=False):
    """(M,K)bf16 @ (Kp,Np)bf16 + per-column shift [+ residual] [+ ReLU], bf16 output.

    `w` (BN-scale folded, K/N padded) and `shift` are prepared once at init.  K and N stay
    padded to 128 multiples end-to-end, so normally no A padding / output slicing happens.
    """
    M, K = a.shape
    Kp, Np = w.shape
    if K != Kp:                                          # only conv1 (K = 9*3 -> 128)
        a = jnp.pad(a, ((0, 0), (0, Kp - K)))
    tm, Mp = _pick_tm(M)
    if Mp != M:
        a = jnp.pad(a, ((0, Mp - M), (0, 0)))
    tn = _largest_tile(Np, _TN)
    # v7x: keep >= 2 parallel (i, j) tiles so the second TensorCore has work.
    if (Mp // tm) * (Np // tn) < 2:
        if tn >= 256 and (tn // 2) % 128 == 0:
            tn //= 2
        elif tm >= 16 and tm % 16 == 0:
            tm //= 2
    tk = _pick_tk(Kp, tm, tn)

    args = [a, w, shift]
    in_specs = [
        pl.BlockSpec((tm, tk), lambda i, j, k: (i, k)),
        pl.BlockSpec((tk, tn), lambda i, j, k: (k, j)),
        pl.BlockSpec((1, tn), lambda i, j, k: (0, j)),
    ]
    if residual is not None:
        res = residual if Mp == M else jnp.pad(residual, ((0, Mp - M), (0, 0)))
        args.append(res)
        # residual block index is independent of k: fetched once per (i, j) output tile
        in_specs.append(pl.BlockSpec((tm, tn), lambda i, j, k: (i, j)))

    grid = (Mp // tm, Np // tn, Kp // tk)
    out = pl.pallas_call(
        _make_matmul_kernel(residual is not None, relu),
        out_shape=jax.ShapeDtypeStruct((Mp, Np), jnp.bfloat16),
        grid=grid,
        in_specs=in_specs,
        out_specs=pl.BlockSpec((tm, tn), lambda i, j, k: (i, j)),
        scratch_shapes=[pltpu.VMEM((tm, tn), jnp.float32)],
        compiler_params=pltpu.CompilerParams(
            dimension_semantics=("parallel", "parallel", "arbitrary")),
    )(*args)
    return out if Mp == M else out[:M]


# ----------------------------------------------------------------------------
# MaxPool2d(3, stride=2, padding=1) — six stride-2 phase views, one Pallas kernel
# ----------------------------------------------------------------------------

def _maxpool_kernel(e0_ref, e1_ref, e2_ref, o0_ref, o1_ref, o2_ref, out_ref):
    Ho = out_ref.shape[1]
    m = jnp.maximum(jnp.maximum(o0_ref[...], o1_ref[...]), o2_ref[...])
    for r in (e0_ref, e1_ref, e2_ref):
        m = jnp.maximum(m, r[:, :Ho, :, :])          # rows 2*ho   (leading-axis slice)
        m = jnp.maximum(m, r[:, 1:Ho + 1, :, :])     # rows 2*ho+2
    out_ref[...] = m


def maxpool2d_3x3_s2_p1(x):
    """PyTorch MaxPool2d(kernel_size=3, stride=2, padding=1) on (channel-padded) NHWC."""
    N, H, W, C = x.shape
    Ho = (H - 1) // 2 + 1
    Wo = (W - 1) // 2 + 1
    xp = jnp.pad(x, ((0, 0), (1, 1), (1, 1), (0, 0)), constant_values=-jnp.inf)
    # Even-row / odd-row views x 3 column phases (cols 2wo, 2wo+1, 2wo+2), each already
    # decimated by 2 in W so no lane/sublane-strided access is needed inside the kernel.
    even = [xp[:, 0:2 * Ho + 1:2, j:j + 2 * Wo - 1:2, :] for j in range(3)]
    odd = [xp[:, 1:2 * Ho:2, j:j + 2 * Wo - 1:2, :] for j in range(3)]
    e_spec = pl.BlockSpec((1, Ho + 1, Wo, C), lambda n: (n, 0, 0, 0))
    o_spec = pl.BlockSpec((1, Ho, Wo, C), lambda n: (n, 0, 0, 0))
    return pl.pallas_call(
        _maxpool_kernel,
        out_shape=jax.ShapeDtypeStruct((N, Ho, Wo, C), x.dtype),
        grid=(N,),
        in_specs=[e_spec] * 3 + [o_spec] * 3,
        out_specs=o_spec,
        compiler_params=pltpu.CompilerParams(dimension_semantics=("parallel",)),
    )(*even, *odd)


# ----------------------------------------------------------------------------
# Fused head: AdaptiveAvgPool2d((1,1)) + Linear(512,512) + ReLU + Dropout + Linear(512,50)
# ----------------------------------------------------------------------------

def _head_kernel(x_ref, w1_ref, b1_ref, w2_ref, b2_ref, o_ref):
    x = jnp.mean(x_ref[...].astype(jnp.float32), axis=1)           # global avg pool
    h = jnp.dot(x.astype(jnp.bfloat16), w1_ref[...],
                preferred_element_type=jnp.float32) + b1_ref[...]
    h = jnp.maximum(h, 0.0)
    # TODO(synk): nn.Dropout(0.4) is identity in inference mode; training-mode masking omitted.
    o = jnp.dot(h.astype(jnp.bfloat16), w2_ref[...],
                preferred_element_type=jnp.float32) + b2_ref[...]
    o_ref[...] = o


def head_forward(head, x):
    N, H, W, C = x.shape
    xr = x.reshape(N, H * W, C)
    vmem = pl.BlockSpec(memory_space=pltpu.MemorySpace.VMEM)
    out = pl.pallas_call(
        _head_kernel,
        out_shape=jax.ShapeDtypeStruct((N, head["w2"].shape[1]), jnp.float32),
        in_specs=[vmem] * 5,
        out_specs=vmem,
    )(xr, head["w1"], head["b1"], head["w2"], head["b2"])
    return out[:, :head["n_classes"]]


# ----------------------------------------------------------------------------
# Conv = im2col (bf16, channel-padded) + fused tiled Pallas matmul
# ----------------------------------------------------------------------------

def _im2col(x, kh, kw, stride, pad):
    """bf16 NHWC -> (N*Ho*Wo, kh*kw*C).  C is already padded to a 128 multiple (except the
    3-channel network input), so K needs no further per-layer padding."""
    N, H, W, C = x.shape
    Ho = (H + 2 * pad - kh) // stride + 1
    Wo = (W + 2 * pad - kw) // stride + 1
    if pad:
        x = jnp.pad(x, ((0, 0), (pad, pad), (pad, pad), (0, 0)))
    cols = [x[:, i:i + stride * Ho:stride, j:j + stride * Wo:stride, :]
            for i in range(kh) for j in range(kw)]
    patches = jnp.stack(cols, axis=3)                 # (N, Ho, Wo, kh*kw, C)
    return patches.reshape(N * Ho * Wo, kh * kw * C), (N, Ho, Wo)
    # TODO(synk): fully de-duplicated im2col (taps streamed as a K sub-axis of the grid
    # straight from the NHWC activation) would cut activation HBM reads a further ~kh*kw x.


def conv_bn(x, conv, stride, pad, relu=True, residual=None):
    """Conv2d(bias=False) + BatchNorm2d(eval, folded) [+ residual] [+ ReLU], bf16 in/out."""
    cols, (N, Ho, Wo) = _im2col(x, conv["kh"], conv["kw"], stride, pad)
    res = None
    if residual is not None:
        res = residual.reshape(N * Ho * Wo, residual.shape[-1])
    out = fused_matmul(cols, conv["w"], conv["shift"], residual=res, relu=relu)
    return out.reshape(N, Ho, Wo, conv["Np"])


# ----------------------------------------------------------------------------
# Parameter preparation (once at init): layout, padding, BN folding
# ----------------------------------------------------------------------------

def _prepare_conv(w, bn, cin_pad=None):
    cout, cin, kh, kw = w.shape
    gamma, beta, mean, var = bn
    inv_std = 1.0 / jnp.sqrt(var + 1e-5)
    scale = gamma * inv_std
    shift = beta - mean * scale
    w = w * scale[:, None, None, None]                 # fold BN scale into f32 weights
    cin_p = cin if cin_pad is None else cin_pad
    if cin_p != cin:                                   # zero rows for padded input channels
        w = jnp.pad(w, ((0, 0), (0, cin_p - cin), (0, 0), (0, 0)))
    K, N = kh * kw * cin_p, cout
    Kp, Np = _round_up(K, 128), _round_up(N, 128)
    w2 = jnp.transpose(w, (2, 3, 1, 0)).reshape(K, N)
    w2 = jnp.pad(w2, ((0, Kp - K), (0, Np - N))).astype(jnp.bfloat16)
    shift_p = jnp.pad(shift.reshape(1, N), ((0, 0), (0, Np - N)))
    return {"w": w2, "shift": shift_p, "kh": kh, "kw": kw, "Np": Np}


def _raw_conv(key, cout, cin, k):
    fan_in = cin * k * k
    std = (2.0 / fan_in) ** 0.5
    w = std * jax.random.normal(key, (cout, cin, k, k), jnp.float32)
    bn = (jnp.ones((cout,), jnp.float32), jnp.zeros((cout,), jnp.float32),
          jnp.zeros((cout,), jnp.float32), jnp.ones((cout,), jnp.float32))
    return w, bn


def init_params(key):
    keys = iter(jax.random.split(key, 64))

    def conv(cout, cin, k, cin_pad=None):
        return _prepare_conv(*_raw_conv(next(keys), cout, cin, k), cin_pad=cin_pad)

    params = {"conv1": conv(64, 3, 3)}                 # custom conv1: 3->64, k3 s1 p1
    in_c = 64
    stages = []
    # ResNet34: BasicBlock counts [3, 4, 6, 3], widths [64, 128, 256, 512]
    for out_c, n_blocks, stride in [(64, 3, 1), (128, 4, 2), (256, 6, 2), (512, 3, 2)]:
        stage = []
        for b in range(n_blocks):
            s = stride if b == 0 else 1
            blk = {"conv1": conv(out_c, in_c, 3, cin_pad=_round_up(in_c, 128)),
                   "conv2": conv(out_c, out_c, 3, cin_pad=_round_up(out_c, 128)),
                   "stride": s}
            if s != 1 or in_c != out_c:
                blk["downsample"] = conv(out_c, in_c, 1, cin_pad=_round_up(in_c, 128))
            stage.append(blk)
            in_c = out_c
        stages.append(stage)
    params["layers"] = stages

    # custom FC head: Linear(512, 512) -> ReLU -> Dropout(0.4) -> Linear(512, 50)
    n_cls = 50
    np2 = _round_up(n_cls, 128)
    fc1_w = (2.0 / 512) ** 0.5 * jax.random.normal(next(keys), (512, 512), jnp.float32)
    fc2_w = (2.0 / 512) ** 0.5 * jax.random.normal(next(keys), (n_cls, 512), jnp.float32)
    params["head"] = {
        "w1": fc1_w.T.astype(jnp.bfloat16),
        "b1": jnp.zeros((1, 512), jnp.float32),
        "w2": jnp.pad(fc2_w.T, ((0, 0), (0, np2 - n_cls))).astype(jnp.bfloat16),
        "b2": jnp.zeros((1, np2), jnp.float32),
        "n_classes": n_cls,
    }
    return params


# ----------------------------------------------------------------------------
# Forward pass
# ----------------------------------------------------------------------------

def resnet34_forward(params, x_nchw):
    x = jnp.transpose(x_nchw, (0, 2, 3, 1)).astype(jnp.bfloat16)   # NCHW -> NHWC, bf16

    x = conv_bn(x, params["conv1"], stride=1, pad=1, relu=True)    # conv1 + bn1 + relu
    x = maxpool2d_3x3_s2_p1(x)                                     # maxpool 3x3/s2/p1

    for stage in params["layers"]:                                 # layer1..layer4
        for blk in stage:
            identity = x
            s = blk["stride"]
            if "downsample" in blk:
                identity = conv_bn(x, blk["downsample"], stride=s, pad=0, relu=False)
            out = conv_bn(x, blk["conv1"], stride=s, pad=1, relu=True)
            x = conv_bn(out, blk["conv2"], stride=1, pad=1, relu=True,
                        residual=identity)                         # add, then ReLU

    return head_forward(params["head"], x)                         # (N, 50) f32 logits


if __name__ == "__main__":
    key = jax.random.PRNGKey(0)
    k_param, k_input = jax.random.split(key)
    params = init_params(k_param)
    x = jax.random.normal(k_input, (2, 3, 16, 16), jnp.float32)    # NCHW, small spatial
    logits = resnet34_forward(params, x)
    logits = jax.block_until_ready(logits)
    assert logits.shape == (2, 50) and logits.dtype == jnp.float32
    assert bool(jnp.all(jnp.isfinite(logits)))
    print("KERNEL_OK")
</pallas_src>

<mosaic_0001>
module attributes {stable_mosaic.version = 11 : i64} {
  func.func @kernel(%arg0: i32, %arg1: i32, %arg2: i32, %arg3: memref<256x128xbf16, #tpu.memory_space<vmem>>, %arg4: memref<128x128xbf16, #tpu.memory_space<vmem>>, %arg5: memref<1x128xf32, #tpu.memory_space<vmem>>, %arg6: memref<256x128xbf16, #tpu.memory_space<vmem>>, %arg7: memref<256x128xf32, #tpu.memory_space<vmem>>) attributes {dimension_semantics = [#tpu.dimension_semantics<parallel>, #tpu.dimension_semantics<parallel>, #tpu.dimension_semantics<arbitrary>], iteration_bounds = array<i64: 2, 1, 1>, scalar_prefetch = 0 : i64, scratch_operands = 1 : i64, tpu.core_type = #tpu.core_type<tc>, window_params = [{transform_indices = @transform_0, window_bounds = array<i64: 256, 128>}, {transform_indices = @transform_1, window_bounds = array<i64: 128, 128>}, {transform_indices = @transform_2, window_bounds = array<i64: 1, 128>}, {transform_indices = @transform_3, window_bounds = array<i64: 256, 128>}]} {
    %c0_i32 = arith.constant 0 : i32
    %0 = arith.cmpi eq, %arg2, %c0_i32 : i32
    %1 = arith.extui %0 : i1 to i32
    %c0_i32_0 = arith.constant 0 : i32
    %2 = arith.cmpi ne, %1, %c0_i32_0 : i32
    scf.if %2 {
      %cst_10 = arith.constant 0.000000e+00 : f32
      %12 = vector.broadcast %cst_10 : f32 to vector<256x128xf32>
      %c0_11 = arith.constant 0 : index
      %c0_12 = arith.constant 0 : index
      %13 = vector.load %arg7[%c0_11, %c0_12] : memref<256x128xf32, #tpu.memory_space<vmem>>, vector<256x128xf32>
      tpu.vector_store %arg7[%c0_11, %c0_12], %12 {strides = array<i32>} : memref<256x128xf32, #tpu.memory_space<vmem>>, vector<256x128xf32>,
    } else {
    }
    %c0 = arith.constant 0 : index
    %c0_1 = arith.constant 0 : index
    %3 = vector.load %arg7[%c0, %c0_1] : memref<256x128xf32, #tpu.memory_space<vmem>>, vector<256x128xf32>
    %c0_2 = arith.constant 0 : index
    %c0_3 = arith.constant 0 : index
    %4 = vector.load %arg3[%c0_2, %c0_3] : memref<256x128xbf16, #tpu.memory_space<vmem>>, vector<256x128xbf16>
    %c0_4 = arith.constant 0 : index
    %c0_5 = arith.constant 0 : index
    %5 = vector.load %arg4[%c0_4, %c0_5] : memref<128x128xbf16, #tpu.memory_space<vmem>>, vector<128x128xbf16>
    %cst = arith.constant dense<0.000000e+00> : vector<256x128xf32>
    %6 = tpu.matmul %4, %5, %cst {dimension_numbers = #tpu.dot_dimension_numbers<[1], [0], [0], [1], [0, 0, 1, 1], [], []>} : vector<256x128xbf16>, vector<128x128xbf16>, vector<256x128xf32> -> vector<256x128xf32>
    %7 = arith.addf %3, %6 : vector<256x128xf32>
    %c0_6 = arith.constant 0 : index
    %c0_7 = arith.constant 0 : index
    %8 = vector.load %arg7[%c0_6, %c0_7] : memref<256x128xf32, #tpu.memory_space<vmem>>, vector<256x128xf32>
    tpu.vector_store %arg7[%c0_6, %c0_7], %7 {strides = array<i32>} : memref<256x128xf32, #tpu.memory_space<vmem>>, vector<256x128xf32>,
    %c0_i32_8 = arith.constant 0 : i32
    %9 = arith.cmpi eq, %arg2, %c0_i32_8 : i32
    %10 = arith.extui %9 : i1 to i32
    %c0_i32_9 = arith.constant 0 : i32
    %11 = arith.cmpi ne, %10, %c0_i32_9 : i32
    scf.if %11 {
      %c0_10 = arith.constant 0 : index
      %c0_11 = arith.constant 0 : index
      %12 = vector.load %arg7[%c0_10, %c0_11] : memref<256x128xf32, #tpu.memory_space<vmem>>, vector<256x128xf32>
      %c0_12 = arith.constant 0 : index
      %c0_13 = arith.constant 0 : index
      %13 = vector.load %arg5[%c0_12, %c0_13] : memref<1x128xf32, #tpu.memory_space<vmem>>, vector<1x128xf32>
      %14 = vector.broadcast %13 : vector<1x128xf32> to vector<256x128xf32>
      %15 = arith.addf %12, %14 : vector<256x128xf32>
      %cst_14 = arith.constant 0.000000e+00 : f32
      %16 = vector.broadcast %cst_14 : f32 to vector<256x128xf32>
      %17 = arith.maximumf %15, %16 : vector<256x128xf32>
      %18 = arith.truncf %17 : vector<256x128xf32> to vector<256x128xbf16>
      %c0_15 = arith.constant 0 : index
      %c0_16 = arith.constant 0 : index
      %19 = vector.load %arg6[%c0_15, %c0_16] : memref<256x128xbf16, #tpu.memory_space<vmem>>, vector<256x128xbf16>
      tpu.vector_store %arg6[%c0_15, %c0_16], %18 {strides = array<i32>} : memref<256x128xbf16, #tpu.memory_space<vmem>>, vector<256x128xbf16>,
    } else {
    }
    return
  }
  func.func @transform_0(%arg0: i32, %arg1: i32, %arg2: i32) -> (i32, i32) {
    %c0_i32 = arith.constant 0 : i32
    return %arg0, %arg2 : i32, i32
  }
  func.func @transform_1(%arg0: i32, %arg1: i32, %arg2: i32) -> (i32, i32) {
    %c0_i32 = arith.constant 0 : i32
    return %arg2, %arg1 : i32, i32
  }
  func.func @transform_2(%arg0: i32, %arg1: i32, %arg2: i32) -> (i32, i32) {
    %c0_i32 = arith.constant 0 : i32
    %c0_i32_0 = arith.constant 0 : i32
    return %c0_i32, %arg1 : i32, i32
  }
  func.func @transform_3(%arg0: i32, %arg1: i32, %arg2: i32) -> (i32, i32) {
    %c0_i32 = arith.constant 0 : i32
    return %arg0, %arg1 : i32, i32
  }
}

</mosaic_0001>

<bundles_post_ra>
// kernel: tpu_custom_call.1
= control target key start
LH: loop header
LB: loop body
LE: loop exit
PB: predicated region body
PF: predicated region fallthrough
CT: control target
= control target key end

     0   :  { %8 = vsyncpa [#allocation4], 0  ;;  %s1962_s0 = inlined_call_operand.hbm [shape: bf16[512,128], index: 0, kind: input, shape index: {}]   ;;  %s1963_s1 = inlined_call_operand.hbm [shape: bf16[128,128], index: 1, kind: input, shape index: {}]   ;;  %s1964_s2 = inlined_call_operand.vmem [shape: f32[1,128], index: 2, kind: input, shape index: {}]   ;;  %s1965_s3 = inlined_call_operand.hbm [shape: bf16[512,128], index: 3, kind: output, shape index: {}]  }
   0x1   :  { %10 = vsyncpa [#allocation4 + $0x1], 0 }
   0x2   :  { %11 = vsyncpa [#allocation7], 0 }
   0x3   :  { %12 = vsyncpa [#allocation5], 0 }
   0x4   :  { %14 = vsyncpa [#allocation5 + $0x1], 0  ;;  %s1697_s12 = smov 0   ;;  %s1699_s13 = smov 0  }
   0x5   :  { %s1701_s14 = smov 0   ;;  %s1703_s15 = smov 0  }
   0x6   :  { %s1705_s16 = smov 0   ;;  %s1707_s17 = smov 0  }
   0x7 LB: > { %s1137_s18 = sadd.s32 4294967295, %s1668_s17   ;;  %s1138_s19 = sadd.s32 4294967294, %s1668_s17   ;;  %s1668_s17 = sphi %s1707_s17, %s20_s17   ;;  %s1664_s16 = sphi %s1705_s16, %s1987_s16   ;;  %s1660_s15 = sphi %s1703_s15, %s1986_s15   ;;  %s1656_s14 = sphi %s1701_s14, %s1985_s14   ;;  %s1652_s13 = sphi %s1699_s13, %s1984_s13   ;;  %s1648_s12 = sphi %s1697_s12, %s1983_s12  }
   0x8   : > { %p61_p0 = scmp.ne.s32.totalorder %s1652_s13, %s1648_s12  ;;  %p1731_p1 = scmp.eq.s32.totalorder %s1137_s18, 0 }
   0x9   : > { %p1735_p2 = scmp.eq.s32.totalorder %s1137_s18, 1  ;;  %p147_p3 = scmp.eq.s32.totalorder %s1138_s19, 1 }
   0xa   : > { %p1741_p4 = por %p1731_p1, %p61_p0  ;;  %p1139_p5 = scmp.ge.s32.totalorder %s1668_s17, 1 }
   0xb   : > { %p1746_p6 = por %p147_p3, %p61_p0  ;;  %p154_p7 = scmp.lt.s32.totalorder %s1668_s17, 3 }
   0xc   : > { %s1971_s22 = scalar_select %p1741_p4, 1, 0 }
   0xd   : > { %s1972_s23 = scalar_select %p1746_p6, 1, 0 }
   0xe   : > { %p1751_p8 = pnand %p1139_p5, %p154_p7  ;;  %s1670_s25 = smov [#allocation6]  }
   0xf   : > { %s170_s26 = sshll.u32 %s1670_s25, 4  ;;  %s39_s28 = sadd.s32 1, %s1664_s16  ;;  %s171_s26 = int_to_ptr.vmem [resolvable:$true] %s170_s26 }
  0x10   : > { %p1437_p9 = pneg %p1751_p8  ;;  %s1541_s29 = scalar_lea.vmem %s171_s26, 1024 }
  0x11   : > { %p1542_p13 = scmp.ne.s32.totalorder %s171_s26, %s1541_s29  ;;  %p1549_p5 = scmp.lt.s32.totalorder %s171_s26, %s171_s26 }
  0x12   : > { %p1760_p11 = pnand %p1437_p9, %p1731_p1  ;;  %p1550_p7 = scmp.lt.s32.totalorder %s1541_s29, %s1541_s29 }
  0x14   : > { %p1532_p12 = pneg %p1760_p11  ;;  %p1551_p6 = por %p1550_p7, %p1549_p5 }
  0x16   : > { %p1544_p0 = pnand %p1542_p13, %p1532_p12 }
  0x18   : > { %p1545_p3 = pneg %p1544_p0 }
  0x1a   : > { %p1552_p4 = pnand %p1551_p6, %p1545_p3 }
  0x1c   : > { %1555 = shalt.err (!%p1552_p4)
}
  0x1d   : > { %s1967_s30 = smov 64   ;;  %s1968_s4 = smov 4  }
  0x1e   : > { %1440 = dma.hbm_to_vmem [thread:$0]  (!%p1760_p11), %s1963_s1, 1024, %s171_s26, [#allocation7], %s1967_s30, %s1967_s30, %s1968_s4  }
  0x1f   : > { %p41_p4 = scmp.ge.s32.totalorder %s39_s28, 2  ;;  %s48_s7 = sadd.s32 1, %s1656_s14 }
  0x20   : > { %p55_p6 = scmp.ne.s32.totalorder %s1656_s14, %s1652_s13  ;;  %p56_p9 = scmp.eq.s32.totalorder %s1668_s17, 0 }
  0x21   : > { %s1989_s28 = smov (%p41_p4, %s39_s28), 0  ;;  %p1450_p0 = scmp.lt.s32.totalorder %s1668_s17, 2 }
  0x22   : > { %p1781_p12 = por %p56_p9, %p55_p6  ;;  %p1787_p13 = por %p1735_p2, %p55_p6 }
  0x23   : > { %s43_s10 = ssub.s32 %s1664_s16, %s1989_s28  ;;  %s190_s11 = sand.u32 1, %s1656_s14  }
  0x24   : > { %p46_p11 = scmp.eq.s32.totalorder %s43_s10, 0  ;;  %s1143_s18 = sshll.u32 %s190_s11, 7 }
  0x25   : > { %s1212_s25 = sshll.u32 %s1664_s16, 11  ;;  %s194_s5 = scalar_lea.vmem [#allocation3], %s1143_s18 }
  0x26   : > { %s1796_s19 = scalar_select %p46_p11, %s1656_s14, %s48_s7  }
  0x27   : > { %s201_s29 = scalar_lea.hbm %s1962_s0, %s1212_s25  ;;  %s202_s6 = sshll.u32 %s194_s5, 4  ;;  %s203_s6 = int_to_ptr.vmem [resolvable:$true] %s202_s6 }
  0x28   : > { %p1804_p2 = pnand %p1450_p0, %p1781_p12  ;;  %s191_s30 = scalar_lea.sflag [#allocation4], %s190_s11 }
  0x29   : > { %s1569_s10 = scalar_lea.vmem %s203_s6, 2048  ;;  %s1673_s7 = smov [#allocation3]  }
  0x2a   : > { %p1558_p3 = pneg %p1804_p2  ;;  %p1570_p5 = scmp.ne.s32.totalorder %s203_s6, %s1569_s10 }
  0x2b   : > { %s1574_s4 = sshll.u32 %s1673_s7, 4  ;;  %s1575_s4 = int_to_ptr.vmem [resolvable:$false] %s1574_s4 }
  0x2c   : > { %p1572_p7 = pnand %p1570_p5, %p1558_p3  ;;  %s1576_s25 = scalar_lea.vmem %s1575_s4, 4096 }
  0x2d   : > { %p1577_p6 = scmp.lt.s32.totalorder %s203_s6, %s1575_s4  ;;  %p1578_p9 = scmp.lt.s32.totalorder %s1576_s25, %s1569_s10 }
  0x2e   : > { %p1573_p4 = pneg %p1572_p7 }
  0x2f   : > { %p1579_p11 = por %p1578_p9, %p1577_p6 }
  0x31   : > { %p1580_p10 = pnand %p1579_p11, %p1573_p4 }
  0x33   : > { %1583 = shalt.err (!%p1580_p10)
}
  0x34   : > { %s1978_s8 = smov 4   ;;  %s1979_s18 = smov 64  }
  0x35   : > { %1444 = dma.hbm_to_vmem [thread:$0]  (!%p1804_p2), %s201_s29, 2048, %s203_s6, %s191_s30, %s1979_s18, %s1979_s18, %s1978_s8  }
  0x36   : > { %214 = sbr.rel (%p1751_p8) target bundleno = 338 (0x152), region = 32  ;;  %s1818_s11 = sand.u32 (!%p1751_p8), 1, %s1652_s13  }
  0x37   : > { %s1147_s4 = sshll.u32 (!%p1751_p8), %s1818_s11, 7  ;;  %s217_s26 = scalar_lea.sflag (!%p1751_p8), [#allocation4], %s1818_s11 }
  0x38   : > { %s1824_s27 = scalar_lea.vmem (!%p1751_p8), [#allocation3], %s1147_s4  ;;  %p1980_p10 = scmp.ne.s32.totalorder (!%p1751_p8), %s1971_s22, 0 }
  0x3b   : > { %1635 = dma.done.wait (%p1980_p10), %s217_s26, 2048  }
  0x3c   : > { %1637 = vsyncadd (%p1980_p10), %s217_s26, 4294965248 }
  0x3d   : > { %1639 = dma.done.wait (%p1731_p1), [#allocation7], 1024  }
  0x3e   : > { %1641 = vsyncadd (%p1731_p1), [#allocation7], 4294966272  ;;  %v1506_v0 = vld [vmem:[#allocation6 + $0x38] sm:$0xff]   ;;  %v1507_v1 = vld [vmem:[#allocation6 + $0x30] sm:$0xff]   ;;  %s1867_s24 = scalar_lea.vmem [#allocation8], %s1147_s4  ;;  %s1245_s30 = sshll.u32 %s1660_s15, 11 }
  0x3f   : > { %1365 = vmatprep.subr.bf16.mxu0 %v1506_v0  ;;  %1413 = vmatprep.subr.bf16.mxu1 %v1506_v0  ;;  %v1508_v2 = vld [vmem:[#allocation6 + $0x28] sm:$0xff]   ;;  %v1509_v3 = vld [vmem:[#allocation6 + $0x20] sm:$0xff]   ;;  %v1510_v6 = vld [vmem:[#allocation6 + $0x18] sm:$0xff]   ;;  %s1023_s29 = sshll.u32 %s1867_s24, 4  ;;  %s1908_s21 = scalar_lea.hbm %s1965_s3, %s1245_s30  ;;  %s1910_s29 = int_to_ptr.vmem [resolvable:$true] %s1023_s29 }
  0x40   : > { %1366 = vmatpush3.bf16.msra.mxu0 %v1506_v0  ;;  %1421 = vmatpush3.bf16.msra.mxu1 %v1506_v0  ;;  %v1514_v4 = vld [vmem:[%s1824_s27] sm:$0xff]   ;;  %v1511_v7 = vld [vmem:[#allocation6 + $0x10] sm:$0xff]   ;;  %v1512_v8 = vld [vmem:[#allocation6 + $0x8] sm:$0xff]   ;;  %s1009_s15 = scalar_lea.sflag [#allocation5], %s1818_s11  ;;  %s1584_s10 = scalar_lea.vmem %s1910_s29, 2048 }
  0x41   : > { %1367 = vmatprep.subr.bf16.mxu0 %v1507_v1  ;;  %1414 = vmatprep.subr.bf16.mxu1 %v1507_v1  ;;  %v1515_v5 = vld [vmem:[%s1824_s27 + $0x40] sm:$0xff]   ;;  %v1516_v10 = vld [vmem:[%s1824_s27 + $0x8] sm:$0xff]   ;;  %v1518_v12 = vld [vmem:[%s1824_s27 + $0x10] sm:$0xff]   ;;  %p1585_p1 = scmp.ne.s32.totalorder %s1910_s29, %s1584_s10  ;;  %s1674_s7 = smov [#allocation8]  }
  0x42   : > { %1381 = vmatprep.mubr.bf16.mxu0 %v1514_v4  ;;  %1397 = vmatprep.mubr.bf16.mxu1 %v1515_v5  ;;  %v1513_v9 = vld [vmem:[#allocation6] sm:$0xff]   ;;  %v1517_v11 = vld [vmem:[%s1824_s27 + $0x48] sm:$0xff]   ;;  %v1519_v13 = vld [vmem:[%s1824_s27 + $0x50] sm:$0xff]   ;;  %s1588_s25 = sshll.u32 %s1674_s7, 4  ;;  %s1589_s25 = int_to_ptr.vmem [resolvable:$false] %s1588_s25 }
  0x43   : > { %v1520_v14 = vld [vmem:[%s1824_s27 + $0x18] sm:$0xff]   ;;  %v1522_v16 = vld [vmem:[%s1824_s27 + $0x20] sm:$0xff]   ;;  %v1524_v18 = vld [vmem:[%s1824_s27 + $0x28] sm:$0xff]   ;;  %p1586_p8 = pnand %p1585_p1, %p1787_p13  ;;  %s1590_s8 = scalar_lea.vmem %s1589_s25, 4096 }
  0x44   : > { %1368 = vmatpush3.bf16.msra.mxu0 %v1507_v1  ;;  %1422 = vmatpush3.bf16.msra.mxu1 %v1507_v1  ;;  %v1521_v15 = vld [vmem:[%s1824_s27 + $0x58] sm:$0xff]   ;;  %v1523_v17 = vld [vmem:[%s1824_s27 + $0x60] sm:$0xff]   ;;  %v1525_v19 = vld [vmem:[%s1824_s27 + $0x68] sm:$0xff]   ;;  %p1591_p0 = scmp.lt.s32.totalorder %s1910_s29, %s1589_s25  ;;  %p1592_p2 = scmp.lt.s32.totalorder %s1590_s8, %s1584_s10 }
  0x45   : > { %1369 = vmatprep.subr.bf16.mxu0 %v1508_v2  ;;  %1415 = vmatprep.subr.bf16.mxu1 %v1508_v2  ;;  %v1526_v20 = vld [vmem:[%s1824_s27 + $0x30] sm:$0xff]   ;;  %v1528_v22 = vld [vmem:[%s1824_s27 + $0x38] sm:$0xff]   ;;  %v1853_v24 = vld [vmem:[%s1964_s2] ss:$0 sm:$0xff]  ;;  %p1587_p12 = pneg %p1586_p8 }
  0x46   : > { %v1527_v21 = vld [vmem:[%s1824_s27 + $0x70] sm:$0xff]   ;;  %v1529_v23 = vld [vmem:[%s1824_s27 + $0x78] sm:$0xff]   ;;  %p1593_p3 = por %p1592_p2, %p1591_p0 }
  0x48   : > { %1370 = vmatpush3.bf16.msra.mxu0 %v1508_v2  ;;  %1423 = vmatpush3.bf16.msra.mxu1 %v1508_v2  ;;  %p1594_p5 = pnand %p1593_p3, %p1587_p12 }
  0x49   : > { %1371 = vmatprep.subr.bf16.mxu0 %v1509_v3  ;;  %1416 = vmatprep.subr.bf16.mxu1 %v1509_v3 }
  0x4c   : > { %1372 = vmatpush3.bf16.msra.mxu0 %v1509_v3  ;;  %1424 = vmatpush3.bf16.msra.mxu1 %v1509_v3 }
  0x4d   : > { %1373 = vmatprep.subr.bf16.mxu0 %v1510_v6  ;;  %1417 = vmatprep.subr.bf16.mxu1 %v1510_v6 }
  0x50   : > { %1374 = vmatpush3.bf16.msra.mxu0 %v1510_v6  ;;  %1425 = vmatpush3.bf16.msra.mxu1 %v1510_v6 }
  0x51   : > { %1375 = vmatprep.subr.bf16.mxu0 %v1511_v7  ;;  %1418 = vmatprep.subr.bf16.mxu1 %v1511_v7 }
  0x54   : > { %1376 = vmatpush3.bf16.msra.mxu0 %v1511_v7  ;;  %1426 = vmatpush3.bf16.msra.mxu1 %v1511_v7 }
  0x55   : > { %1377 = vmatprep.subr.bf16.mxu0 %v1512_v8  ;;  %1419 = vmatprep.subr.bf16.mxu1 %v1512_v8 }
  0x58   : > { %1378 = vmatpush3.bf16.msra.mxu0 %v1512_v8  ;;  %1427 = vmatpush3.bf16.msra.mxu1 %v1512_v8 }
  0x59   : > { %1379 = vmatprep.subr.bf16.mxu0 %v1513_v9  ;;  %1420 = vmatprep.subr.bf16.mxu1 %v1513_v9 }
  0x5c   : > { %1380 = vmatpush3.bf16.msra.mxu0 %v1513_v9  ;;  %1428 = vmatpush3.bf16.msra.mxu1 %v1513_v9 }
  0x5f   : > { %1382 = vmatmul.mubr.bf16.vlgmr.msra.gmra.mxu0 %v1516_v10  ;;  %1398 = vmatmul.mubr.bf16.vlgmr.msra.gmra.mxu1 %v1517_v11 }
  0x60   : > { %1385 = vmatprep.mubr.bf16.mxu0 %v1518_v12  ;;  %1401 = vmatprep.mubr.bf16.mxu1 %v1519_v13 }
  0x67   : > { %1386 = vmatmul.mubr.bf16.gmra.mxu0 %v1520_v14  ;;  %1402 = vmatmul.mubr.bf16.gmra.mxu1 %v1521_v15 }
  0x68   : > { %1389 = vmatprep.mubr.bf16.mxu0 %v1522_v16  ;;  %1405 = vmatprep.mubr.bf16.mxu1 %v1523_v17 }
  0x6f   : > { %1390 = vmatmul.mubr.bf16.gmra.mxu0 %v1524_v18  ;;  %1406 = vmatmul.mubr.bf16.gmra.mxu1 %v1525_v19 }
  0x70   : > { %1393 = vmatprep.mubr.bf16.mxu0 %v1526_v20  ;;  %1409 = vmatprep.mubr.bf16.mxu1 %v1527_v21 }
  0x77   : > { %1394 = vmatmul.mubr.bf16.gmra.mxu0 %v1528_v22  ;;  %1410 = vmatmul.mubr.bf16.gmra.mxu1 %v1529_v23 }
 0x11f   : > { %v1383_v25 = vpop.f32.mrf.mxu0  ;;  %v1399_v26 = vpop.f32.mrf.mxu1 }
 0x120   : > { %v786_v27 = vadd.f32 %v1383_v25, %v1853_v24  ;;  %v802_v28 = vadd.f32 %v1399_v26, %v1853_v24 }
 0x121   : > { %v551_v29 = vpop.f32.mrf.mxu0  ;;  %v615_v30 = vpop.f32.mrf.mxu1 }
 0x122   : > { %v784_v31 = vadd.f32 %v1853_v24, %v551_v29  ;;  %v800_v32 = vadd.f32 %v1853_v24, %v615_v30  ;;  %v818_v37 = vmax.f32 %v786_v27, 0.0  ;;  %v834_v38 = vmax.f32 %v802_v28, 0.0 }
 0x123   : > { %v1384_v33 = vpop.f32.mrf.mxu0  ;;  %v1400_v34 = vpop.f32.mrf.mxu1 }
 0x124   : > { %v787_v35 = vadd.f32 %v1384_v33, %v1853_v24  ;;  %v803_v36 = vadd.f32 %v1400_v34, %v1853_v24  ;;  %v816_v45 = vmax.f32 %v784_v31, 0.0  ;;  %v832_v46 = vmax.f32 %v800_v32, 0.0 }
 0x125   : > { %v554_v39 = vpop.f32.mrf.mxu0  ;;  %v618_v40 = vpop.f32.mrf.mxu1 }
 0x126   : > { %v819_v41 = vmax.f32 %v787_v35, 0.0  ;;  %v835_v42 = vmax.f32 %v803_v36, 0.0  ;;  %v785_v43 = vadd.f32 %v1853_v24, %v554_v39  ;;  %v801_v44 = vadd.f32 %v1853_v24, %v618_v40 }
 0x127   : > { %v1387_v47 = vpop.f32.mrf.mxu0  ;;  %v1403_v48 = vpop.f32.mrf.mxu1 }
 0x128   : > { %v1254_v49 = vpack.c.bf16 %v819_v41, %v818_v37  ;;  %v1294_v50 = vpack.c.bf16 %v835_v42, %v834_v38  ;;  %v817_v51 = vmax.f32 %v785_v43, 0.0  ;;  %v833_v52 = vmax.f32 %v801_v44, 0.0 }
 0x129   : > { %v790_v53 = vadd.f32 %v1387_v47, %v1853_v24  ;;  %v806_v54 = vadd.f32 %v1403_v48, %v1853_v24  ;;  %v567_v55 = vpop.f32.mrf.mxu0  ;;  %v631_v56 = vpop.f32.mrf.mxu1 }
 0x12a   : > { %1326 = vst [vmem:[%s1867_s24 + $0x8] sm:$0xff] %v1254_v49   ;;  %1334 = vst [vmem:[%s1867_s24 + $0x48] sm:$0xff] %v1294_v50   ;;  %v1249_v57 = vpack.c.bf16 %v817_v51, %v816_v45  ;;  %v1289_v58 = vpack.c.bf16 %v833_v52, %v832_v46  ;;  %v788_v59 = vadd.f32 %v1853_v24, %v567_v55 }
 0x12b   : > { %v804_v60 = vadd.f32 %v1853_v24, %v631_v56  ;;  %v1388_v61 = vpop.f32.mrf.mxu0  ;;  %v1404_v62 = vpop.f32.mrf.mxu1  ;;  %v822_v1 = vmax.f32 %v790_v53, 0.0  ;;  %v838_v2 = vmax.f32 %v806_v54, 0.0 }
 0x12c   : > { %1250 = vst [vmem:[%s1867_s24] sm:$0xff] %v1249_v57   ;;  %1333 = vst [vmem:[%s1867_s24 + $0x40] sm:$0xff] %v1289_v58   ;;  %v791_v63 = vadd.f32 %v1388_v61, %v1853_v24  ;;  %v807_v0 = vadd.f32 %v1404_v62, %v1853_v24  ;;  %v820_v9 = vmax.f32 %v788_v59, 0.0 }
 0x12d   : > { %v570_v3 = vpop.f32.mrf.mxu0  ;;  %v634_v4 = vpop.f32.mrf.mxu1  ;;  %v836_v10 = vmax.f32 %v804_v60, 0.0 }
 0x12e   : > { %v823_v5 = vmax.f32 %v791_v63, 0.0  ;;  %v839_v6 = vmax.f32 %v807_v0, 0.0  ;;  %v789_v7 = vadd.f32 %v1853_v24, %v570_v3  ;;  %v805_v8 = vadd.f32 %v1853_v24, %v634_v4 }
 0x12f   : > { %v1391_v11 = vpop.f32.mrf.mxu0  ;;  %v1407_v12 = vpop.f32.mrf.mxu1 }
 0x130   : > { %v1264_v13 = vpack.c.bf16 %v823_v5, %v822_v1  ;;  %v1304_v14 = vpack.c.bf16 %v839_v6, %v838_v2  ;;  %v821_v15 = vmax.f32 %v789_v7, 0.0  ;;  %v837_v16 = vmax.f32 %v805_v8, 0.0 }
 0x131   : > { %v794_v17 = vadd.f32 %v1391_v11, %v1853_v24  ;;  %v810_v18 = vadd.f32 %v1407_v12, %v1853_v24  ;;  %v583_v19 = vpop.f32.mrf.mxu0  ;;  %v647_v20 = vpop.f32.mrf.mxu1 }
 0x132   : > { %1328 = vst [vmem:[%s1867_s24 + $0x18] sm:$0xff] %v1264_v13   ;;  %1336 = vst [vmem:[%s1867_s24 + $0x58] sm:$0xff] %v1304_v14   ;;  %v1259_v21 = vpack.c.bf16 %v821_v15, %v820_v9  ;;  %v1299_v22 = vpack.c.bf16 %v837_v16, %v836_v10  ;;  %v792_v23 = vadd.f32 %v1853_v24, %v583_v19 }
 0x133   : > { %v808_v25 = vadd.f32 %v1853_v24, %v647_v20  ;;  %v1392_v26 = vpop.f32.mrf.mxu0  ;;  %v1408_v27 = vpop.f32.mrf.mxu1  ;;  %v826_v30 = vmax.f32 %v794_v17, 0.0  ;;  %v842_v31 = vmax.f32 %v810_v18, 0.0 }
 0x134   : > { %1327 = vst [vmem:[%s1867_s24 + $0x10] sm:$0xff] %v1259_v21   ;;  %1335 = vst [vmem:[%s1867_s24 + $0x50] sm:$0xff] %v1299_v22   ;;  %v795_v28 = vadd.f32 %v1392_v26, %v1853_v24  ;;  %v811_v29 = vadd.f32 %v1408_v27, %v1853_v24  ;;  %v824_v38 = vmax.f32 %v792_v23, 0.0 }
 0x135   : > { %v586_v32 = vpop.f32.mrf.mxu0  ;;  %v650_v33 = vpop.f32.mrf.mxu1  ;;  %v840_v39 = vmax.f32 %v808_v25, 0.0 }
 0x136   : > { %v827_v34 = vmax.f32 %v795_v28, 0.0  ;;  %v843_v35 = vmax.f32 %v811_v29, 0.0  ;;  %v793_v36 = vadd.f32 %v1853_v24, %v586_v32  ;;  %v809_v37 = vadd.f32 %v1853_v24, %v650_v33 }
 0x137   : > { %v1395_v40 = vpop.f32.mrf.mxu0  ;;  %v1411_v41 = vpop.f32.mrf.mxu1 }
 0x138   : > { %v1274_v42 = vpack.c.bf16 %v827_v34, %v826_v30  ;;  %v1314_v43 = vpack.c.bf16 %v843_v35, %v842_v31  ;;  %v825_v44 = vmax.f32 %v793_v36, 0.0  ;;  %v841_v45 = vmax.f32 %v809_v37, 0.0 }
 0x139   : > { %v798_v46 = vadd.f32 %v1395_v40, %v1853_v24  ;;  %v814_v47 = vadd.f32 %v1411_v41, %v1853_v24  ;;  %v599_v48 = vpop.f32.mrf.mxu0  ;;  %v663_v49 = vpop.f32.mrf.mxu1 }
 0x13a   : > { %1330 = vst [vmem:[%s1867_s24 + $0x28] sm:$0xff] %v1274_v42   ;;  %1338 = vst [vmem:[%s1867_s24 + $0x68] sm:$0xff] %v1314_v43   ;;  %v1269_v50 = vpack.c.bf16 %v825_v44, %v824_v38  ;;  %v1309_v51 = vpack.c.bf16 %v841_v45, %v840_v39  ;;  %v796_v52 = vadd.f32 %v1853_v24, %v599_v48 }
 0x13b   : > { %v812_v53 = vadd.f32 %v1853_v24, %v663_v49  ;;  %v1396_v54 = vpop.f32.mrf.mxu0  ;;  %v1412_v55 = vpop.f32.mrf.mxu1  ;;  %v830_v58 = vmax.f32 %v798_v46, 0.0  ;;  %v846_v59 = vmax.f32 %v814_v47, 0.0 }
 0x13c   : > { %1329 = vst [vmem:[%s1867_s24 + $0x20] sm:$0xff] %v1269_v50   ;;  %1337 = vst [vmem:[%s1867_s24 + $0x60] sm:$0xff] %v1309_v51   ;;  %v799_v56 = vadd.f32 %v1396_v54, %v1853_v24  ;;  %v815_v57 = vadd.f32 %v1412_v55, %v1853_v24  ;;  %v828_v2 = vmax.f32 %v796_v52, 0.0 }
 0x13d   : > { %v602_v60 = vpop.f32.mrf.mxu0  ;;  %v666_v61 = vpop.f32.mrf.mxu1  ;;  %v844_v3 = vmax.f32 %v812_v53, 0.0 }
 0x13e   : > { %v831_v62 = vmax.f32 %v799_v56, 0.0  ;;  %v847_v63 = vmax.f32 %v815_v57, 0.0  ;;  %v797_v0 = vadd.f32 %v1853_v24, %v602_v60  ;;  %v813_v1 = vadd.f32 %v1853_v24, %v666_v61 }
 0x140   : > { %v1284_v4 = vpack.c.bf16 %v831_v62, %v830_v58  ;;  %v1324_v5 = vpack.c.bf16 %v847_v63, %v846_v59  ;;  %v829_v6 = vmax.f32 %v797_v0, 0.0  ;;  %v845_v7 = vmax.f32 %v813_v1, 0.0 }
 0x142   : > { %1332 = vst [vmem:[%s1867_s24 + $0x38] sm:$0xff] %v1284_v4   ;;  %1340 = vst [vmem:[%s1867_s24 + $0x78] sm:$0xff] %v1324_v5   ;;  %v1279_v24 = vpack.c.bf16 %v829_v6, %v828_v2  ;;  %v1319_v8 = vpack.c.bf16 %v845_v7, %v844_v3 }
 0x144   : > { %1331 = vst [vmem:[%s1867_s24 + $0x30] sm:$0xff] %v1279_v24   ;;  %1339 = vst [vmem:[%s1867_s24 + $0x70] sm:$0xff] %v1319_v8  }
 0x145   : > { %1597 = shalt.err (!%p1594_p5)
}
 0x146   : > { %s1598_s18 = scalar_lea.hbm %s1908_s21, 2048  ;;  %s1602_s27 = scalar_lea.hbm %s1965_s3, 4096 }
 0x147   : > { %p1599_p7 = scmp.ne.s32.totalorder %s1908_s21, %s1598_s18  ;;  %p1603_p9 = scmp.lt.s32.totalorder %s1908_s21, %s1965_s3 }
 0x148   : > { %p1604_p11 = scmp.lt.s32.totalorder %s1602_s27, %s1598_s18 }
 0x149   : > { %p1600_p4 = pnand %p1599_p7, %p1787_p13 }
 0x14a   : > { %p1605_p10 = por %p1604_p11, %p1603_p9 }
 0x14b   : > { %p1601_p6 = pneg %p1600_p4 }
 0x14d   : > { %p1606_p1 = pnand %p1605_p10, %p1601_p6 }
 0x14f   : > { %1609 = shalt.err (!%p1606_p1)
}
 0x150   : > { %s1675_s24 = smov 64   ;;  %s1676_s30 = smov 4  }
 0x151   : > { %1435 = dma.vmem_to_hbm [thread:$0]  (%p1787_p13), %s1910_s29, 2048, %s1908_s21, %s1009_s15, %s1675_s24, %s1675_s24, %s1676_s30  }
 0x152 PF: > { %s1038_s5 = sand.u32 1, %s1648_s12   ;;  %p1981_p8 = scmp.ne.s32.totalorder %s1972_s23, 0 }
 0x153   : > { %p1982_p12 = scmp.ge.s32.totalorder %s1668_s17, 2  ;;  %s1039_s6 = scalar_lea.sflag [#allocation5], %s1038_s5 }
 0x155   : > { %p1446_p0 = pnand %p1982_p12, %p1981_p8 }
 0x157   : > { %p1447_p2 = pneg %p1446_p0 }
 0x159   : > { %1643 = dma.done.wait (%p1447_p2), %s1039_s6, 2048  }
 0x15a   : > { %1645 = vsyncadd (%p1447_p2), %s1039_s6, 4294965248  ;;  %s20_s17 = sadd.s32 1, %s1668_s17   ;;  %s1983_s12 = smov %s1652_s13 }
 0x15b   : > { %p17_p3 = scmp.ge.s32.totalorder %s20_s17, 4   ;;  %s1984_s13 = smov %s1656_s14 }
 0x15c   : > { %s1985_s14 = smov %s1796_s19  ;;  %s1986_s15 = smov %s1664_s16 }
 0x15d   : > { %s1987_s16 = smov %s1989_s28  ;;  %19 = sbr.rel (!%p17_p3) target bundleno = 7 (0x7), region = 93 }
 0x162   :  { %1044 = vsyncpa [#allocation4], 1 }
 0x163   :  { %1046 = vsyncpa [#allocation4 + $0x1], 1 }
 0x164   :  { %1047 = vsyncpa [#allocation7], 1 }
 0x165   :  { %1048 = vsyncpa [#allocation5], 1 }
 0x166   :  { %1050 = vsyncpa [#allocation5 + $0x1], 1 }

</bundles_post_ra>
